<compile_context>
chip_gen: v6e
topology: v6e:2x2x1
jax: 0.10.0
libtpu: 0.0.40
codegen_flags: <defaults>
</compile_context>

<pallas_src>
import functools

import jax
import jax.numpy as jnp
from jax.experimental import pallas as pl
from jax.experimental.pallas import tpu as pltpu


# ----------------------------------------------------------------------------
# Elementwise activation (in-kernel and reference variants).
# ----------------------------------------------------------------------------
def _apply_activation(x, activation, *, approx=False):
    if activation is None:
        return x
    if activation == "relu":
        return jnp.maximum(x, 0.0)
    if activation in ("silu", "sigmoid"):
        denom = 1.0 + jnp.exp(-x)
        sig = pl.reciprocal(denom, approx=True) if approx else 1.0 / denom
        return x * sig if activation == "silu" else sig
    if activation == "elu":
        # PyTorch default alpha = 1.0; clamp exp arg so the untaken positive
        # branch cannot overflow.
        return jnp.where(x > 0.0, x, jnp.exp(jnp.minimum(x, 0.0)) - 1.0)
    if activation == "tanh":
        return jnp.tanh(x)
    if activation == "sin":
        return jnp.sin(x)
    raise ValueError(f"Activation {activation} is not yet supported.")


# ----------------------------------------------------------------------------
# Kernel bodies.
# ----------------------------------------------------------------------------
def _tile_matmul(a, b, mxu_bf16):
    """(tm, tk) x (tn, tk) -> (tm, tn), contracting the shared last dim."""
    if mxu_bf16 and a.dtype == jnp.float32:
        a = a.astype(jnp.bfloat16)
        b = b.astype(jnp.bfloat16)
    return jax.lax.dot_general(
        a, b, (((1,), (1,)), ((), ())), preferred_element_type=jnp.float32
    )


def _epilogue(acc, b_ref, res_ref, activation):
    out = acc + b_ref[...].astype(jnp.float32)
    out = _apply_activation(out, activation, approx=True)
    if res_ref is not None:
        out = out + res_ref[...].astype(jnp.float32)
    return out


def _ann_kernel_multi(*refs, activation, residual, mxu_bf16):
    """Multi-K-step variant: f32 accumulator carried across the K axis."""
    if residual:
        x_ref, w_ref, b_ref, res_ref, o_ref, acc_ref = refs
    else:
        x_ref, w_ref, b_ref, o_ref, acc_ref = refs
        res_ref = None

    k = pl.program_id(2)
    prod = _tile_matmul(x_ref[...], w_ref[...], mxu_bf16)

    @pl.when(k == 0)
    def _():
        acc_ref[...] = prod          # direct write: no zero-init + RMW pass

    @pl.when(k != 0)
    def _():
        acc_ref[...] += prod

    @pl.when(k == pl.num_programs(2) - 1)
    def _():
        o_ref[...] = _epilogue(acc_ref[...], b_ref, res_ref,
                               activation).astype(o_ref.dtype)


def _ann_kernel_single(*refs, activation, residual, mxu_bf16):
    """Single-K-step variant: no accumulator scratch, compute -> output."""
    if residual:
        x_ref, w_ref, b_ref, res_ref, o_ref = refs
    else:
        x_ref, w_ref, b_ref, o_ref = refs
        res_ref = None

    prod = _tile_matmul(x_ref[...], w_ref[...], mxu_bf16)
    o_ref[...] = _epilogue(prod, b_ref, res_ref, activation).astype(o_ref.dtype)


# ----------------------------------------------------------------------------
# Wrapper.
# ----------------------------------------------------------------------------
def _round_up(x, m):
    return ((x + m - 1) // m) * m


def ann_layer(x, weight, bias=None, *, activation="relu",
              residual_connection=False,
              tile_m=512, tile_n=512, tile_k=512,
              mxu_bf16=False):
    """Pallas implementation of ANNLayer.forward.

    x:      (..., in_dims)
    weight: (out_dims, in_dims)   -- PyTorch nn.Linear layout (NOT transposed)
    bias:   (out_dims,) or None
    """
    out_dims, in_dims = weight.shape
    assert x.shape[-1] == in_dims
    lead_shape = x.shape[:-1]

    x_flat = x.reshape(-1, in_dims)
    m = x_flat.shape[0]

    residual = bool(residual_connection) and (in_dims == out_dims)

    dt_bytes = x.dtype.itemsize
    align_m = {1: 32, 2: 16}.get(dt_bytes, 8)      # dtype-aware sublane align

    # --- M / N tiles: fixed aligned tiles + cdiv grid (masked output tails) --
    tm = m if m <= tile_m else max((tile_m // align_m) * align_m, align_m)
    tn = out_dims if out_dims <= tile_n else max((tile_n // 128) * 128, 128)

    # Guarantee >= 2 "parallel" grid steps when feasible (v7x dual TensorCore /
    # v5e-v6e megacore).
    if pl.cdiv(m, tm) * pl.cdiv(out_dims, tn) < 2:
        if m >= 2 * align_m:
            tm = _round_up(pl.cdiv(m, 2), align_m)
        elif out_dims >= 2 * 128:
            tn = _round_up(pl.cdiv(out_dims, 2), 128)

    # --- K tile: exact (full dim or a 128-multiple divisor), else zero-pad. --
    x_in = x_flat
    w_in = weight
    if in_dims <= tile_k:
        tk = in_dims
    else:
        tk = 0
        t = max((tile_k // 128) * 128, 128)
        while t >= 128:
            if in_dims % t == 0:
                tk = t
                break
            t -= 128
        if tk == 0:
            # No aligned divisor: zero-pad the reduction axis (zeros contribute
            # nothing to the accumulator; OOB K reads are never trusted).
            tk = max((tile_k // 128) * 128, 128)
            k_pad = _round_up(in_dims, tk) - in_dims
            x_in = jnp.pad(x_flat, ((0, 0), (0, k_pad)))
            w_in = jnp.pad(weight, ((0, 0), (0, k_pad)))
    k_dim = x_in.shape[1]

    b = bias if bias is not None else jnp.zeros((out_dims,), x.dtype)
    b2 = b.reshape(1, out_dims)

    grid = (pl.cdiv(m, tm), pl.cdiv(out_dims, tn), k_dim // tk)
    multi_k = grid[2] > 1

    in_specs = [
        pl.BlockSpec((tm, tk), lambda i, j, k: (i, k)),   # x tile
        pl.BlockSpec((tn, tk), lambda i, j, k: (j, k)),   # W (out,in) tile
        pl.BlockSpec((1, tn), lambda i, j, k: (0, j)),    # bias tile
    ]
    args = [x_in, w_in, b2]
    if residual:
        in_specs.append(pl.BlockSpec((tm, tn), lambda i, j, k: (i, j)))
        args.append(x_flat)                               # residual tile

    if multi_k:
        kernel = functools.partial(_ann_kernel_multi, activation=activation,
                                   residual=residual, mxu_bf16=mxu_bf16)
        scratch_shapes = [pltpu.VMEM((tm, tn), jnp.float32)]
    else:
        kernel = functools.partial(_ann_kernel_single, activation=activation,
                                   residual=residual, mxu_bf16=mxu_bf16)
        scratch_shapes = []

    # Explicit VMEM budget from the actual working set (double-buffered inputs
    # and outputs + f32 accumulator), capped for v7x's 64 MiB physical VMEM.
    work = 2 * dt_bytes * (tm * tk + tn * tk + tn)        # x / W / bias buffers
    work += 2 * dt_bytes * tm * tn                        # output buffers
    if residual:
        work += 2 * dt_bytes * tm * tn                    # residual buffers
    if multi_k:
        work += 4 * tm * tn                               # f32 accumulator
    vmem_limit = int(work * 1.5) + (2 << 20)
    vmem_limit = min(max(vmem_limit, 16 << 20), 48 << 20)
    vmem_limit = max(vmem_limit, work + (1 << 20))

    flops = 2 * m * out_dims * in_dims
    transcendentals = (m * out_dims
                       if activation in ("silu", "sigmoid", "tanh", "elu", "sin")
                       else 0)
    bytes_accessed = dt_bytes * (m * in_dims + out_dims * in_dims + out_dims
                                 + m * out_dims
                                 + (m * in_dims if residual else 0))

    out = pl.pallas_call(
        kernel,
        out_shape=jax.ShapeDtypeStruct((m, out_dims), x.dtype),
        grid_spec=pltpu.PrefetchScalarGridSpec(
            num_scalar_prefetch=0,
            grid=grid,
            in_specs=in_specs,
            out_specs=pl.BlockSpec((tm, tn), lambda i, j, k: (i, j)),
            scratch_shapes=scratch_shapes,
        ),
        compiler_params=pltpu.CompilerParams(
            dimension_semantics=("parallel", "parallel", "arbitrary"),
            vmem_limit_bytes=vmem_limit,
        ),
        cost_estimate=pl.CostEstimate(
            flops=flops,
            transcendentals=transcendentals,
            bytes_accessed=bytes_accessed,
        ),
    )(*args)

    return out.reshape(lead_shape + (out_dims,))


# ----------------------------------------------------------------------------
# Pure-JAX reference matching the PyTorch module.
# ----------------------------------------------------------------------------
def ann_layer_ref(x, weight, bias=None, *, activation="relu",
                  residual_connection=False):
    out = jnp.matmul(x.astype(jnp.float32), weight.T.astype(jnp.float32))
    if bias is not None:
        out = out + bias.astype(jnp.float32)
    out = _apply_activation(out, activation, approx=False)
    if residual_connection and weight.shape[0] == weight.shape[1]:
        out = out + x.astype(jnp.float32)
    return out.astype(x.dtype)


if __name__ == "__main__":
    key = jax.random.PRNGKey(0)

    def make(key, batch_shape, in_dims, out_dims):
        k1, k2, k3, key = jax.random.split(key, 4)
        x = jax.random.normal(k1, batch_shape + (in_dims,), dtype=jnp.float32)
        w = jax.random.normal(k2, (out_dims, in_dims), dtype=jnp.float32)
        w = w * (in_dims ** -0.5)
        b = jax.random.normal(k3, (out_dims,), dtype=jnp.float32) * 0.1
        return x, w, b, key

    # --- Test 1: small shapes, relu + residual, single K step, split-M grid --
    x, w, b, key = make(key, (64,), 32, 32)
    out = jax.block_until_ready(
        ann_layer(x, w, b, activation="relu", residual_connection=True))
    ref = jax.block_until_ready(
        ann_layer_ref(x, w, b, activation="relu", residual_connection=True))
    if not jnp.allclose(out, ref, rtol=1e-4, atol=1e-4):
        raise AssertionError(
            f"relu+residual mismatch: max|diff|={jnp.max(jnp.abs(out - ref))}")

    # --- Test 2: tiled path (grid > 1 on every axis), tanh, no residual ------
    x, w, b, key = make(key, (256,), 256, 256)
    out = jax.block_until_ready(
        ann_layer(x, w, b, activation="tanh", residual_connection=False,
                  tile_m=128, tile_n=128, tile_k=128))
    ref = jax.block_until_ready(
        ann_layer_ref(x, w, b, activation="tanh", residual_connection=False))
    if not jnp.allclose(out, ref, rtol=1e-4, atol=1e-4):
        raise AssertionError(
            f"tanh tiled mismatch: max|diff|={jnp.max(jnp.abs(out - ref))}")

    # --- Test 3: leading dims + non-8-multiple M tail, silu (approx recip) ---
    x, w, b, key = make(key, (4, 25), 40, 48)
    out = jax.block_until_ready(
        ann_layer(x, w, b, activation="silu", residual_connection=False))
    ref = jax.block_until_ready(
        ann_layer_ref(x, w, b, activation="silu", residual_connection=False))
    if not jnp.allclose(out, ref, rtol=1e-2, atol=1e-2):
        raise AssertionError(
            f"silu mismatch: max|diff|={jnp.max(jnp.abs(out - ref))}")

    # --- Test 4: K not divisible by tk (zero-pad path), no activation --------
    x, w, b, key = make(key, (64,), 200, 64)
    out = jax.block_until_ready(
        ann_layer(x, w, b, activation=None, residual_connection=False,
                  tile_k=128))
    ref = jax.block_until_ready(
        ann_layer_ref(x, w, b, activation=None, residual_connection=False))
    if not jnp.allclose(out, ref, rtol=1e-4, atol=1e-4):
        raise AssertionError(
            f"K-pad mismatch: max|diff|={jnp.max(jnp.abs(out - ref))}")

    print("KERNEL_OK")
</pallas_src>

<mosaic_0001>
module attributes {stable_mosaic.version = 11 : i64} {
  func.func @_ann_kernel_single(%arg0: i32, %arg1: i32, %arg2: i32, %arg3: memref<32x32xf32, #tpu.memory_space<vmem>>, %arg4: memref<32x32xf32, #tpu.memory_space<vmem>>, %arg5: memref<1x32xf32, #tpu.memory_space<vmem>>, %arg6: memref<32x32xf32, #tpu.memory_space<vmem>>, %arg7: memref<32x32xf32, #tpu.memory_space<vmem>>) attributes {dimension_semantics = [#tpu.dimension_semantics<parallel>, #tpu.dimension_semantics<parallel>, #tpu.dimension_semantics<arbitrary>], iteration_bounds = array<i64: 2, 1, 1>, scalar_prefetch = 0 : i64, scratch_operands = 0 : i64, tpu.core_type = #tpu.core_type<tc>, window_params = [{transform_indices = @transform_0, window_bounds = array<i64: 32, 32>}, {transform_indices = @transform_1, window_bounds = array<i64: 32, 32>}, {transform_indices = @transform_2, window_bounds = array<i64: 1, 32>}, {transform_indices = @transform_3, window_bounds = array<i64: 32, 32>}, {transform_indices = @transform_4, window_bounds = array<i64: 32, 32>}]} {
    %c0 = arith.constant 0 : index
    %c0_0 = arith.constant 0 : index
    %0 = vector.load %arg3[%c0, %c0_0] : memref<32x32xf32, #tpu.memory_space<vmem>>, vector<32x32xf32>
    %c0_1 = arith.constant 0 : index
    %c0_2 = arith.constant 0 : index
    %1 = vector.load %arg4[%c0_1, %c0_2] : memref<32x32xf32, #tpu.memory_space<vmem>>, vector<32x32xf32>
    %cst = arith.constant dense<0.000000e+00> : vector<32x32xf32>
    %2 = tpu.matmul %0, %1, %cst {dimension_numbers = #tpu.dot_dimension_numbers<[1], [1], [0], [0], [0, 0, 1, 0], [], []>} : vector<32x32xf32>, vector<32x32xf32>, vector<32x32xf32> -> vector<32x32xf32>
    %c0_3 = arith.constant 0 : index
    %c0_4 = arith.constant 0 : index
    %3 = vector.load %arg5[%c0_3, %c0_4] : memref<1x32xf32, #tpu.memory_space<vmem>>, vector<1x32xf32>
    %4 = vector.broadcast %3 : vector<1x32xf32> to vector<32x32xf32>
    %5 = arith.addf %2, %4 : vector<32x32xf32>
    %cst_5 = arith.constant 0.000000e+00 : f32
    %6 = vector.broadcast %cst_5 : f32 to vector<32x32xf32>
    %7 = arith.maximumf %5, %6 : vector<32x32xf32>
    %c0_6 = arith.constant 0 : index
    %c0_7 = arith.constant 0 : index
    %8 = vector.load %arg6[%c0_6, %c0_7] : memref<32x32xf32, #tpu.memory_space<vmem>>, vector<32x32xf32>
    %9 = arith.addf %7, %8 : vector<32x32xf32>
    %c0_8 = arith.constant 0 : index
    %c0_9 = arith.constant 0 : index
    %10 = vector.load %arg7[%c0_8, %c0_9] : memref<32x32xf32, #tpu.memory_space<vmem>>, vector<32x32xf32>
    tpu.vector_store %arg7[%c0_8, %c0_9], %9 {strides = array<i32>} : memref<32x32xf32, #tpu.memory_space<vmem>>, vector<32x32xf32>,
    return
  }
  func.func @transform_0(%arg0: i32, %arg1: i32, %arg2: i32) -> (i32, i32) {
    %c0_i32 = arith.constant 0 : i32
    return %arg0, %arg2 : i32, i32
  }
  func.func @transform_1(%arg0: i32, %arg1: i32, %arg2: i32) -> (i32, i32) {
    %c0_i32 = arith.constant 0 : i32
    return %arg1, %arg2 : i32, i32
  }
  func.func @transform_2(%arg0: i32, %arg1: i32, %arg2: i32) -> (i32, i32) {
    %c0_i32 = arith.constant 0 : i32
    %c0_i32_0 = arith.constant 0 : i32
    return %c0_i32, %arg1 : i32, i32
  }
  func.func @transform_3(%arg0: i32, %arg1: i32, %arg2: i32) -> (i32, i32) {
    %c0_i32 = arith.constant 0 : i32
    return %arg0, %arg1 : i32, i32
  }
  func.func @transform_4(%arg0: i32, %arg1: i32, %arg2: i32) -> (i32, i32) {
    %c0_i32 = arith.constant 0 : i32
    return %arg0, %arg1 : i32, i32
  }
}

</mosaic_0001>

<bundles_post_ra>
// kernel: tpu_custom_call.1
= control target key start
LH: loop header
LB: loop body
LE: loop exit
PB: predicated region body
PF: predicated region fallthrough
CT: control target
= control target key end

     0   :  { %s713_s15 = smov 0   ;;  %s715_s16 = smov 0   ;;  %s793_s0 = inlined_call_operand.vmem [shape: f32[64,32], index: 0, kind: input, shape index: {}]   ;;  %s794_s1 = inlined_call_operand.vmem [shape: f32[32,32], index: 1, kind: input, shape index: {}]   ;;  %s795_s2 = inlined_call_operand.vmem [shape: f32[1,32], index: 2, kind: input, shape index: {}]   ;;  %s796_s3 = inlined_call_operand.vmem [shape: f32[64,32], index: 3, kind: input, shape index: {}]   ;;  %s797_s4 = inlined_call_operand.vmem [shape: f32[64,32], index: 4, kind: output, shape index: {}]  }
   0x1   :  { %s717_s17 = smov 0  }
   0x2 LB: > { %s33_s18 = sadd.s32 1, %s682_s16  ;;  %p592_p0 = scmp.ge.s32.totalorder %s686_s17, 1  ;;  %s686_s17 = sphi %s717_s17, %s14_s17   ;;  %s682_s16 = sphi %s715_s16, %s799_s16   ;;  %s678_s15 = sphi %s713_s15, %s798_s15  }
   0x3   : > { %p35_p1 = scmp.ge.s32.totalorder %s33_s18, 2  ;;  %p229_p2 = scmp.lt.s32.totalorder %s686_s17, 3 }
   0x5   : > { %s801_s18 = smov (%p35_p1, %s33_s18), 0  ;;  %p230_p3 = pnand %p592_p0, %p229_p2 }
   0x6   : > { %s593_s23 = sshll.u32 (!%p230_p3), %s678_s15, 2 }
   0x7   : > { %233 = sbr.rel (%p230_p3) target bundleno = 231 (0xe7), region = 36  ;;  %p281_p4 = scmp.lt.s32.totalorder (!%p230_p3), %s593_s23, 7 }
   0xc   : > { %v326_v0 = vld [vmem:[%s794_s1 + $0x18] sm:$0xff]  ;;  %vm334_vm0 = vcmask 261120   ;;  %v325_v1 = vld [vmem:[%s794_s1 + $0x10] sm:$0xff]  ;;  %s803_s23 = smov (!%p281_p4, %s593_s23), 7  ;;  %v324_v2 = vld [vmem:[%s794_s1 + $0x8] sm:$0xff] }
   0xd   : > { %618 = vmatprep.subr.msk.mxu0 %vm334_vm0, %v326_v0  ;;  %632 = vmatprep.subr.msk.mxu1 %vm334_vm0, %v326_v0  ;;  %s746_s26 = sshll.u32 %s803_s23, 3  ;;  %v323_v5 = vld [vmem:[%s794_s1] sm:$0xff] }
   0xe   : > { %619 = vmatpush3.xpose.msk.msra.mxu0 %vm334_vm0, %v326_v0  ;;  %636 = vmatpush3.xpose.msk.msra.mxu1 %vm334_vm0, %v326_v0  ;;  %s287_s29 = scalar_lea.vmem %s793_s0, %s746_s26  ;;  %v599_v8 = vld [vmem:[%s795_s2] ss:$0 sm:$0xff]  ;;  %s308_s10 = scalar_lea.vmem %s796_s3, %s746_s26 }
   0xf   : > { %620 = vmatprep.subr.msk.mxu0 %vm334_vm0, %v325_v1  ;;  %633 = vmatprep.subr.msk.mxu1 %vm334_vm0, %v325_v1  ;;  %v319_v3 = vld [vmem:[%s287_s29] sm:$0xff]  ;;  %v321_v4 = vld [vmem:[%s287_s29 + $0x10] sm:$0xff]  ;;  %v320_v6 = vld [vmem:[%s287_s29 + $0x8] sm:$0xff]  ;;  %s317_s13 = scalar_lea.vmem %s797_s4, %s746_s26 }
  0x10   : > { %626 = vmatprep.mubr.msk.f32.mxu0 %vm334_vm0, %v319_v3  ;;  %629 = vmatprep.mubr.msk.f32.mxu1 %vm334_vm0, %v321_v4  ;;  %v322_v7 = vld [vmem:[%s287_s29 + $0x18] sm:$0xff]  ;;  %v448_v18 = vld [vmem:[%s308_s10] sm:$0xff]  ;;  %v449_v19 = vld [vmem:[%s308_s10 + $0x8] sm:$0xff] }
  0x11   : > { %v450_v23 = vld [vmem:[%s308_s10 + $0x10] sm:$0xff]  ;;  %v451_v24 = vld [vmem:[%s308_s10 + $0x18] sm:$0xff] }
  0x12   : > { %621 = vmatpush3.xpose.msk.msra.mxu0 %vm334_vm0, %v325_v1  ;;  %637 = vmatpush3.xpose.msk.msra.mxu1 %vm334_vm0, %v325_v1 }
  0x13   : > { %622 = vmatprep.subr.msk.mxu0 %vm334_vm0, %v324_v2  ;;  %634 = vmatprep.subr.msk.mxu1 %vm334_vm0, %v324_v2 }
  0x16   : > { %623 = vmatpush3.xpose.msk.msra.mxu0 %vm334_vm0, %v324_v2  ;;  %638 = vmatpush3.xpose.msk.msra.mxu1 %vm334_vm0, %v324_v2 }
  0x17   : > { %624 = vmatprep.subr.msk.mxu0 %vm334_vm0, %v323_v5  ;;  %635 = vmatprep.subr.msk.mxu1 %vm334_vm0, %v323_v5 }
  0x1a   : > { %625 = vmatpush3.xpose.msk.msra.mxu0 %vm334_vm0, %v323_v5  ;;  %639 = vmatpush3.xpose.msk.msra.mxu1 %vm334_vm0, %v323_v5 }
  0x1d   : > { %627 = vmatmul.mubr.msk.f32.vlgmr.msra.gmra.mxu0 %vm334_vm0, %v320_v6  ;;  %630 = vmatmul.mubr.msk.f32.vlgmr.msra.gmra.mxu1 %vm334_vm0, %v322_v7 }
  0xdd   : > { %v628_v9 = vpop.f32.mrf.mxu0  ;;  %v631_v10 = vpop.f32.mrf.mxu1 }
  0xde   : > { %v431_v11 = vadd.f32 %v628_v9, %v599_v8  ;;  %v441_v12 = vadd.f32 %v631_v10, %v599_v8 }
  0xdf   : > { %v425_v13 = vpop.f32.mrf.mxu0  ;;  %v435_v14 = vpop.f32.mrf.mxu1 }
  0xe0   : > { %v426_v15 = vadd.f32 %v599_v8, %v425_v13  ;;  %v436_v16 = vadd.f32 %v599_v8, %v435_v14  ;;  %v445_v17 = vmax.f32 %v431_v11, 0.0  ;;  %v447_v22 = vmax.f32 %v441_v12, 0.0 }
  0xe2   : > { %v444_v20 = vmax.f32 %v426_v15, 0.0  ;;  %v446_v21 = vmax.f32 %v436_v16, 0.0  ;;  %v453_v26 = vadd.f32 %v449_v19, %v445_v17  ;;  %v455_v28 = vadd.f32 %v451_v24, %v447_v22 }
  0xe4   : > { %v452_v25 = vadd.f32 %v448_v18, %v444_v20  ;;  %v454_v27 = vadd.f32 %v450_v23, %v446_v21  ;;  %457 = vst.msk [vmem:[%s317_s13 + $0x8] sm:$0xff] %vm334_vm0, %v453_v26  ;;  %459 = vst.msk [vmem:[%s317_s13 + $0x18] sm:$0xff] %vm334_vm0, %v455_v28 }
  0xe6   : > { %456 = vst.msk [vmem:[%s317_s13] sm:$0xff] %vm334_vm0, %v452_v25  ;;  %458 = vst.msk [vmem:[%s317_s13 + $0x10] sm:$0xff] %vm334_vm0, %v454_v27 }
  0xe7 PF: > { %s14_s17 = sadd.s32 1, %s686_s17   ;;  %s798_s15 = smov %s682_s16 }
  0xe8   : > { %p11_p5 = scmp.ge.s32.totalorder %s14_s17, 4   ;;  %s799_s16 = smov %s801_s18 }
  0xea   :  { %13 = sbr.rel (!%p11_p5) target bundleno = 2 (0x2), region = 75 }

</bundles_post_ra>
